<compile_context>
chip_gen: v5e
topology: v5e:2x2
jax: 0.10.0
libtpu: 0.0.40
codegen_flags: <defaults>
</compile_context>

<pallas_src>
import functools

import jax
import jax.numpy as jnp
from jax.experimental import pallas as pl
from jax.experimental.pallas import tpu as pltpu


def _round_up(x, m):
    return ((x + m - 1) // m) * m


def _tree_lstm_kernel(hl_ref, cl_ref, hr_ref, cr_ref, wl_ref, wr_ref, b_ref,
                      h_out_ref, c_out_ref):
    """One row-tile of the BinaryTreeLSTM composition.

    hl/cl/hr/cr : (TM, H)    VMEM row tiles
    wl/wr       : (5, H, H)  per-gate weight halves (left / right child), f32
    b           : (5, 1, H)  per-gate bias (forget-gate '+1' already folded in)
    h_out/c_out : (TM, H)
    """
    hl = hl_ref[...]
    hr = hr_ref[...]

    def gate(g):
        # Split matmul (no concat copy); two MXU pushes into one f32 accumulator.
        return (jnp.dot(hl, wl_ref[g], preferred_element_type=jnp.float32)
                + jnp.dot(hr, wr_ref[g], preferred_element_type=jnp.float32)
                + b_ref[g])

    i_g = gate(0)
    fl_g = gate(1)   # "+1" forget bias folded into b in the wrapper
    fr_g = gate(2)
    u_g = gate(3)
    o_g = gate(4)

    cl = cl_ref[...].astype(jnp.float32)
    cr = cr_ref[...].astype(jnp.float32)

    c = (cl * jax.nn.sigmoid(fl_g)
         + cr * jax.nn.sigmoid(fr_g)
         + jnp.tanh(u_g) * jax.nn.sigmoid(i_g))
    h = jax.nn.sigmoid(o_g) * jnp.tanh(c)

    c_out_ref[...] = c.astype(c_out_ref.dtype)
    h_out_ref[...] = h.astype(h_out_ref.dtype)


@functools.partial(jax.jit, static_argnames=("row_tile",))
def binary_tree_lstm_layer(hl, cl, hr, cr, weight, bias, *, row_tile=256):
    """JAX wrapper. hl/cl/hr/cr: (B, L, H). weight: (2H, 5H). bias: (5H,)."""
    B, L, H = hl.shape
    M = B * L
    dtype = hl.dtype
    itemsize = jnp.dtype(dtype).itemsize

    # Minimum legal/efficient sublane multiple per dtype (f32:8, bf16:16, int8:32).
    min_rows = {4: 8, 2: 16, 1: 32}.get(itemsize, 8)

    # Effective row tile: as large as requested, but never bigger than the
    # (sublane-rounded) problem; pad the row axis to a multiple of it.
    rt = max(min_rows, min(row_tile, _round_up(M, min_rows)))
    rt = _round_up(rt, min_rows)
    m_pad = _round_up(M, rt)

    def flat(x):
        x2 = x.reshape(M, H)
        if m_pad != M:
            x2 = jnp.pad(x2, ((0, m_pad - M), (0, 0)))
        return x2

    hl2, cl2, hr2, cr2 = flat(hl), flat(cl), flat(hr), flat(cr)

    # Gate-major weight layout: (2H, 5H) -> (5, 2H, H) -> split into left/right
    # child halves (5, H, H) each. Fold the forget-gate "+1" into the bias.
    w = weight.astype(jnp.float32).reshape(2 * H, 5, H).transpose(1, 0, 2)
    wl = w[:, :H, :]
    wr = w[:, H:, :]
    b = bias.astype(jnp.float32)
    b = b.at[H:3 * H].add(1.0)          # fl, fr columns only
    b = b.reshape(5, 1, H)

    row_spec = pl.BlockSpec((rt, H), lambda i: (i, 0))
    wl_spec = pl.BlockSpec((5, H, H), lambda i: (0, 0, 0))
    wr_spec = pl.BlockSpec((5, H, H), lambda i: (0, 0, 0))
    b_spec = pl.BlockSpec((5, 1, H), lambda i: (0, 0, 0))

    # VMEM budget: 4 in + 2 out row tiles x 2 pipeline buffers, resident weights
    # (assume double-buffered), per-gate f32 intermediates, plus margin.
    # Clamped to [32 MiB, 64 MiB] so it stays legal on v7x.
    io_bytes = 6 * rt * H * itemsize * 2
    w_bytes = (2 * 5 * H * H + 5 * H) * 4 * 2
    gate_bytes = 8 * rt * H * 4
    vmem_limit = int(min(max(io_bytes + w_bytes + gate_bytes + (8 << 20),
                             32 << 20), 64 << 20))

    h_flat, c_flat = pl.pallas_call(
        _tree_lstm_kernel,
        out_shape=(
            jax.ShapeDtypeStruct((m_pad, H), dtype),
            jax.ShapeDtypeStruct((m_pad, H), dtype),
        ),
        grid_spec=pltpu.PrefetchScalarGridSpec(
            num_scalar_prefetch=0,
            grid=(m_pad // rt,),
            in_specs=[row_spec, row_spec, row_spec, row_spec,
                      wl_spec, wr_spec, b_spec],
            out_specs=[row_spec, row_spec],
        ),
        compiler_params=pltpu.CompilerParams(
            dimension_semantics=("parallel",),
            vmem_limit_bytes=vmem_limit),
    )(hl2, cl2, hr2, cr2, wl, wr, b)

    h_flat = h_flat[:M]
    c_flat = c_flat[:M]
    return h_flat.reshape(B, L, H), c_flat.reshape(B, L, H)


def _reference(hl, cl, hr, cr, weight, bias):
    """Pure-JAX reference mirroring the PyTorch forward."""
    H = hl.shape[-1]
    x = jnp.concatenate([hl, hr], axis=-1)
    v = jnp.einsum("blk,kn->bln", x, weight) + bias
    i_g, fl_g, fr_g, u_g, o_g = [v[..., k * H:(k + 1) * H] for k in range(5)]
    c = (cl * jax.nn.sigmoid(fl_g + 1.0)
         + cr * jax.nn.sigmoid(fr_g + 1.0)
         + jnp.tanh(u_g) * jax.nn.sigmoid(i_g))
    h = jax.nn.sigmoid(o_g) * jnp.tanh(c)
    return h, c


if __name__ == "__main__":
    # Small shapes consistent with the module: batch=2, max_length=8, hidden=32.
    B, L, H = 2, 8, 32
    key = jax.random.PRNGKey(0)
    k_hl, k_cl, k_hr, k_cr, k_w, k_b = jax.random.split(key, 6)

    hl = jax.random.normal(k_hl, (B, L, H), dtype=jnp.float32)
    cl = jax.random.normal(k_cl, (B, L, H), dtype=jnp.float32)
    hr = jax.random.normal(k_hr, (B, L, H), dtype=jnp.float32)
    cr = jax.random.normal(k_cr, (B, L, H), dtype=jnp.float32)

    # comp_linear: in_features=2H, out_features=5H.  Stored as (2H, 5H) = W^T.
    scale = 1.0 / jnp.sqrt(2.0 * H)
    weight = jax.random.uniform(k_w, (2 * H, 5 * H), dtype=jnp.float32,
                                minval=-scale, maxval=scale)
    bias = jax.random.uniform(k_b, (5 * H,), dtype=jnp.float32,
                              minval=-scale, maxval=scale)

    h_out, c_out = binary_tree_lstm_layer(hl, cl, hr, cr, weight, bias)
    jax.block_until_ready((h_out, c_out))

    h_ref, c_ref = _reference(hl, cl, hr, cr, weight, bias)
    assert jnp.allclose(h_out, h_ref, atol=1e-5, rtol=1e-5)
    assert jnp.allclose(c_out, c_ref, atol=1e-5, rtol=1e-5)
    assert h_out.shape == (B, L, H) and c_out.shape == (B, L, H)

    print("KERNEL_OK")
</pallas_src>

<mosaic_0001>
module attributes {stable_mosaic.version = 11 : i64} {
  func.func @_tree_lstm_kernel(%arg0: i32, %arg1: memref<16x32xf32, #tpu.memory_space<vmem>>, %arg2: memref<16x32xf32, #tpu.memory_space<vmem>>, %arg3: memref<16x32xf32, #tpu.memory_space<vmem>>, %arg4: memref<16x32xf32, #tpu.memory_space<vmem>>, %arg5: memref<5x32x32xf32, #tpu.memory_space<vmem>>, %arg6: memref<5x32x32xf32, #tpu.memory_space<vmem>>, %arg7: memref<5x1x32xf32, #tpu.memory_space<vmem>>, %arg8: memref<16x32xf32, #tpu.memory_space<vmem>>, %arg9: memref<16x32xf32, #tpu.memory_space<vmem>>) attributes {dimension_semantics = [#tpu.dimension_semantics<parallel>], iteration_bounds = array<i64: 1>, scalar_prefetch = 0 : i64, scratch_operands = 0 : i64, tpu.core_type = #tpu.core_type<tc>, window_params = [{transform_indices = @transform_0, window_bounds = array<i64: 16, 32>}, {transform_indices = @transform_1, window_bounds = array<i64: 16, 32>}, {transform_indices = @transform_2, window_bounds = array<i64: 16, 32>}, {transform_indices = @transform_3, window_bounds = array<i64: 16, 32>}, {pipeline_mode = #tpu.pipeline_mode<synchronous>, transform_indices = @transform_4, window_bounds = array<i64: 5, 32, 32>}, {pipeline_mode = #tpu.pipeline_mode<synchronous>, transform_indices = @transform_5, window_bounds = array<i64: 5, 32, 32>}, {pipeline_mode = #tpu.pipeline_mode<synchronous>, transform_indices = @transform_6, window_bounds = array<i64: 5, 1, 32>}, {transform_indices = @transform_7, window_bounds = array<i64: 16, 32>}, {transform_indices = @transform_8, window_bounds = array<i64: 16, 32>}]} {
    %c0 = arith.constant 0 : index
    %c0_0 = arith.constant 0 : index
    %0 = vector.load %arg1[%c0, %c0_0] : memref<16x32xf32, #tpu.memory_space<vmem>>, vector<16x32xf32>
    %c0_1 = arith.constant 0 : index
    %c0_2 = arith.constant 0 : index
    %1 = vector.load %arg3[%c0_1, %c0_2] : memref<16x32xf32, #tpu.memory_space<vmem>>, vector<16x32xf32>
    %c0_3 = arith.constant 0 : index
    %c0_4 = arith.constant 0 : index
    %c0_5 = arith.constant 0 : index
    %2 = vector.load %arg5[%c0_3, %c0_4, %c0_5] : memref<5x32x32xf32, #tpu.memory_space<vmem>>, vector<1x32x32xf32>
    %3 = vector.shape_cast %2 : vector<1x32x32xf32> to vector<32x32xf32>
    %cst = arith.constant dense<0.000000e+00> : vector<16x32xf32>
    %4 = tpu.matmul %0, %3, %cst {dimension_numbers = #tpu.dot_dimension_numbers<[1], [0], [0], [1], [0, 0, 1, 1], [], []>} : vector<16x32xf32>, vector<32x32xf32>, vector<16x32xf32> -> vector<16x32xf32>
    %c0_6 = arith.constant 0 : index
    %c0_7 = arith.constant 0 : index
    %c0_8 = arith.constant 0 : index
    %5 = vector.load %arg6[%c0_6, %c0_7, %c0_8] : memref<5x32x32xf32, #tpu.memory_space<vmem>>, vector<1x32x32xf32>
    %6 = vector.shape_cast %5 : vector<1x32x32xf32> to vector<32x32xf32>
    %cst_9 = arith.constant dense<0.000000e+00> : vector<16x32xf32>
    %7 = tpu.matmul %1, %6, %cst_9 {dimension_numbers = #tpu.dot_dimension_numbers<[1], [0], [0], [1], [0, 0, 1, 1], [], []>} : vector<16x32xf32>, vector<32x32xf32>, vector<16x32xf32> -> vector<16x32xf32>
    %8 = arith.addf %4, %7 : vector<16x32xf32>
    %c0_10 = arith.constant 0 : index
    %c0_11 = arith.constant 0 : index
    %c0_12 = arith.constant 0 : index
    %9 = vector.load %arg7[%c0_10, %c0_11, %c0_12] : memref<5x1x32xf32, #tpu.memory_space<vmem>>, vector<1x1x32xf32>
    %10 = vector.shape_cast %9 : vector<1x1x32xf32> to vector<1x32xf32>
    %11 = vector.broadcast %10 : vector<1x32xf32> to vector<16x32xf32>
    %12 = arith.addf %8, %11 : vector<16x32xf32>
    %c1 = arith.constant 1 : index
    %c0_13 = arith.constant 0 : index
    %c0_14 = arith.constant 0 : index
    %13 = vector.load %arg5[%c1, %c0_13, %c0_14] : memref<5x32x32xf32, #tpu.memory_space<vmem>>, vector<1x32x32xf32>
    %14 = vector.shape_cast %13 : vector<1x32x32xf32> to vector<32x32xf32>
    %cst_15 = arith.constant dense<0.000000e+00> : vector<16x32xf32>
    %15 = tpu.matmul %0, %14, %cst_15 {dimension_numbers = #tpu.dot_dimension_numbers<[1], [0], [0], [1], [0, 0, 1, 1], [], []>} : vector<16x32xf32>, vector<32x32xf32>, vector<16x32xf32> -> vector<16x32xf32>
    %c1_16 = arith.constant 1 : index
    %c0_17 = arith.constant 0 : index
    %c0_18 = arith.constant 0 : index
    %16 = vector.load %arg6[%c1_16, %c0_17, %c0_18] : memref<5x32x32xf32, #tpu.memory_space<vmem>>, vector<1x32x32xf32>
    %17 = vector.shape_cast %16 : vector<1x32x32xf32> to vector<32x32xf32>
    %cst_19 = arith.constant dense<0.000000e+00> : vector<16x32xf32>
    %18 = tpu.matmul %1, %17, %cst_19 {dimension_numbers = #tpu.dot_dimension_numbers<[1], [0], [0], [1], [0, 0, 1, 1], [], []>} : vector<16x32xf32>, vector<32x32xf32>, vector<16x32xf32> -> vector<16x32xf32>
    %19 = arith.addf %15, %18 : vector<16x32xf32>
    %c1_20 = arith.constant 1 : index
    %c0_21 = arith.constant 0 : index
    %c0_22 = arith.constant 0 : index
    %20 = vector.load %arg7[%c1_20, %c0_21, %c0_22] : memref<5x1x32xf32, #tpu.memory_space<vmem>>, vector<1x1x32xf32>
    %21 = vector.shape_cast %20 : vector<1x1x32xf32> to vector<1x32xf32>
    %22 = vector.broadcast %21 : vector<1x32xf32> to vector<16x32xf32>
    %23 = arith.addf %19, %22 : vector<16x32xf32>
    %c2 = arith.constant 2 : index
    %c0_23 = arith.constant 0 : index
    %c0_24 = arith.constant 0 : index
    %24 = vector.load %arg5[%c2, %c0_23, %c0_24] : memref<5x32x32xf32, #tpu.memory_space<vmem>>, vector<1x32x32xf32>
    %25 = vector.shape_cast %24 : vector<1x32x32xf32> to vector<32x32xf32>
    %cst_25 = arith.constant dense<0.000000e+00> : vector<16x32xf32>
    %26 = tpu.matmul %0, %25, %cst_25 {dimension_numbers = #tpu.dot_dimension_numbers<[1], [0], [0], [1], [0, 0, 1, 1], [], []>} : vector<16x32xf32>, vector<32x32xf32>, vector<16x32xf32> -> vector<16x32xf32>
    %c2_26 = arith.constant 2 : index
    %c0_27 = arith.constant 0 : index
    %c0_28 = arith.constant 0 : index
    %27 = vector.load %arg6[%c2_26, %c0_27, %c0_28] : memref<5x32x32xf32, #tpu.memory_space<vmem>>, vector<1x32x32xf32>
    %28 = vector.shape_cast %27 : vector<1x32x32xf32> to vector<32x32xf32>
    %cst_29 = arith.constant dense<0.000000e+00> : vector<16x32xf32>
    %29 = tpu.matmul %1, %28, %cst_29 {dimension_numbers = #tpu.dot_dimension_numbers<[1], [0], [0], [1], [0, 0, 1, 1], [], []>} : vector<16x32xf32>, vector<32x32xf32>, vector<16x32xf32> -> vector<16x32xf32>
    %30 = arith.addf %26, %29 : vector<16x32xf32>
    %c2_30 = arith.constant 2 : index
    %c0_31 = arith.constant 0 : index
    %c0_32 = arith.constant 0 : index
    %31 = vector.load %arg7[%c2_30, %c0_31, %c0_32] : memref<5x1x32xf32, #tpu.memory_space<vmem>>, vector<1x1x32xf32>
    %32 = vector.shape_cast %31 : vector<1x1x32xf32> to vector<1x32xf32>
    %33 = vector.broadcast %32 : vector<1x32xf32> to vector<16x32xf32>
    %34 = arith.addf %30, %33 : vector<16x32xf32>
    %c3 = arith.constant 3 : index
    %c0_33 = arith.constant 0 : index
    %c0_34 = arith.constant 0 : index
    %35 = vector.load %arg5[%c3, %c0_33, %c0_34] : memref<5x32x32xf32, #tpu.memory_space<vmem>>, vector<1x32x32xf32>
    %36 = vector.shape_cast %35 : vector<1x32x32xf32> to vector<32x32xf32>
    %cst_35 = arith.constant dense<0.000000e+00> : vector<16x32xf32>
    %37 = tpu.matmul %0, %36, %cst_35 {dimension_numbers = #tpu.dot_dimension_numbers<[1], [0], [0], [1], [0, 0, 1, 1], [], []>} : vector<16x32xf32>, vector<32x32xf32>, vector<16x32xf32> -> vector<16x32xf32>
    %c3_36 = arith.constant 3 : index
    %c0_37 = arith.constant 0 : index
    %c0_38 = arith.constant 0 : index
    %38 = vector.load %arg6[%c3_36, %c0_37, %c0_38] : memref<5x32x32xf32, #tpu.memory_space<vmem>>, vector<1x32x32xf32>
    %39 = vector.shape_cast %38 : vector<1x32x32xf32> to vector<32x32xf32>
    %cst_39 = arith.constant dense<0.000000e+00> : vector<16x32xf32>
    %40 = tpu.matmul %1, %39, %cst_39 {dimension_numbers = #tpu.dot_dimension_numbers<[1], [0], [0], [1], [0, 0, 1, 1], [], []>} : vector<16x32xf32>, vector<32x32xf32>, vector<16x32xf32> -> vector<16x32xf32>
    %41 = arith.addf %37, %40 : vector<16x32xf32>
    %c3_40 = arith.constant 3 : index
    %c0_41 = arith.constant 0 : index
    %c0_42 = arith.constant 0 : index
    %42 = vector.load %arg7[%c3_40, %c0_41, %c0_42] : memref<5x1x32xf32, #tpu.memory_space<vmem>>, vector<1x1x32xf32>
    %43 = vector.shape_cast %42 : vector<1x1x32xf32> to vector<1x32xf32>
    %44 = vector.broadcast %43 : vector<1x32xf32> to vector<16x32xf32>
    %45 = arith.addf %41, %44 : vector<16x32xf32>
    %c4 = arith.constant 4 : index
    %c0_43 = arith.constant 0 : index
    %c0_44 = arith.constant 0 : index
    %46 = vector.load %arg5[%c4, %c0_43, %c0_44] : memref<5x32x32xf32, #tpu.memory_space<vmem>>, vector<1x32x32xf32>
    %47 = vector.shape_cast %46 : vector<1x32x32xf32> to vector<32x32xf32>
    %cst_45 = arith.constant dense<0.000000e+00> : vector<16x32xf32>
    %48 = tpu.matmul %0, %47, %cst_45 {dimension_numbers = #tpu.dot_dimension_numbers<[1], [0], [0], [1], [0, 0, 1, 1], [], []>} : vector<16x32xf32>, vector<32x32xf32>, vector<16x32xf32> -> vector<16x32xf32>
    %c4_46 = arith.constant 4 : index
    %c0_47 = arith.constant 0 : index
    %c0_48 = arith.constant 0 : index
    %49 = vector.load %arg6[%c4_46, %c0_47, %c0_48] : memref<5x32x32xf32, #tpu.memory_space<vmem>>, vector<1x32x32xf32>
    %50 = vector.shape_cast %49 : vector<1x32x32xf32> to vector<32x32xf32>
    %cst_49 = arith.constant dense<0.000000e+00> : vector<16x32xf32>
    %51 = tpu.matmul %1, %50, %cst_49 {dimension_numbers = #tpu.dot_dimension_numbers<[1], [0], [0], [1], [0, 0, 1, 1], [], []>} : vector<16x32xf32>, vector<32x32xf32>, vector<16x32xf32> -> vector<16x32xf32>
    %52 = arith.addf %48, %51 : vector<16x32xf32>
    %c4_50 = arith.constant 4 : index
    %c0_51 = arith.constant 0 : index
    %c0_52 = arith.constant 0 : index
    %53 = vector.load %arg7[%c4_50, %c0_51, %c0_52] : memref<5x1x32xf32, #tpu.memory_space<vmem>>, vector<1x1x32xf32>
    %54 = vector.shape_cast %53 : vector<1x1x32xf32> to vector<1x32xf32>
    %55 = vector.broadcast %54 : vector<1x32xf32> to vector<16x32xf32>
    %56 = arith.addf %52, %55 : vector<16x32xf32>
    %c0_53 = arith.constant 0 : index
    %c0_54 = arith.constant 0 : index
    %57 = vector.load %arg2[%c0_53, %c0_54] : memref<16x32xf32, #tpu.memory_space<vmem>>, vector<16x32xf32>
    %c0_55 = arith.constant 0 : index
    %c0_56 = arith.constant 0 : index
    %58 = vector.load %arg4[%c0_55, %c0_56] : memref<16x32xf32, #tpu.memory_space<vmem>>, vector<16x32xf32>
    %59 = arith.negf %23 : vector<16x32xf32>
    %60 = math.exp %59 : vector<16x32xf32>
    %cst_57 = arith.constant 1.000000e+00 : f32
    %61 = vector.broadcast %cst_57 : f32 to vector<16x32xf32>
    %62 = arith.addf %61, %60 : vector<16x32xf32>
    %63 = arith.divf %61, %62 : vector<16x32xf32>
    %64 = arith.mulf %57, %63 : vector<16x32xf32>
    %65 = arith.negf %34 : vector<16x32xf32>
    %66 = math.exp %65 : vector<16x32xf32>
    %cst_58 = arith.constant 1.000000e+00 : f32
    %67 = vector.broadcast %cst_58 : f32 to vector<16x32xf32>
    %68 = arith.addf %67, %66 : vector<16x32xf32>
    %69 = arith.divf %67, %68 : vector<16x32xf32>
    %70 = arith.mulf %58, %69 : vector<16x32xf32>
    %71 = arith.addf %64, %70 : vector<16x32xf32>
    %72 = math.tanh %45 : vector<16x32xf32>
    %73 = arith.negf %12 : vector<16x32xf32>
    %74 = math.exp %73 : vector<16x32xf32>
    %cst_59 = arith.constant 1.000000e+00 : f32
    %75 = vector.broadcast %cst_59 : f32 to vector<16x32xf32>
    %76 = arith.addf %75, %74 : vector<16x32xf32>
    %77 = arith.divf %75, %76 : vector<16x32xf32>
    %78 = arith.mulf %72, %77 : vector<16x32xf32>
    %79 = arith.addf %71, %78 : vector<16x32xf32>
    %80 = arith.negf %56 : vector<16x32xf32>
    %81 = math.exp %80 : vector<16x32xf32>
    %cst_60 = arith.constant 1.000000e+00 : f32
    %82 = vector.broadcast %cst_60 : f32 to vector<16x32xf32>
    %83 = arith.addf %82, %81 : vector<16x32xf32>
    %84 = arith.divf %82, %83 : vector<16x32xf32>
    %85 = math.tanh %79 : vector<16x32xf32>
    %86 = arith.mulf %84, %85 : vector<16x32xf32>
    %c0_61 = arith.constant 0 : index
    %c0_62 = arith.constant 0 : index
    %87 = vector.load %arg9[%c0_61, %c0_62] : memref<16x32xf32, #tpu.memory_space<vmem>>, vector<16x32xf32>
    tpu.vector_store %arg9[%c0_61, %c0_62], %79 {strides = array<i32>} : memref<16x32xf32, #tpu.memory_space<vmem>>, vector<16x32xf32>,
    %c0_63 = arith.constant 0 : index
    %c0_64 = arith.constant 0 : index
    %88 = vector.load %arg8[%c0_63, %c0_64] : memref<16x32xf32, #tpu.memory_space<vmem>>, vector<16x32xf32>
    tpu.vector_store %arg8[%c0_63, %c0_64], %86 {strides = array<i32>} : memref<16x32xf32, #tpu.memory_space<vmem>>, vector<16x32xf32>,
    return
  }
  func.func @transform_0(%arg0: i32) -> (i32, i32) {
    %c0_i32 = arith.constant 0 : i32
    %c0_i32_0 = arith.constant 0 : i32
    return %arg0, %c0_i32 : i32, i32
  }
  func.func @transform_1(%arg0: i32) -> (i32, i32) {
    %c0_i32 = arith.constant 0 : i32
    %c0_i32_0 = arith.constant 0 : i32
    return %arg0, %c0_i32 : i32, i32
  }
  func.func @transform_2(%arg0: i32) -> (i32, i32) {
    %c0_i32 = arith.constant 0 : i32
    %c0_i32_0 = arith.constant 0 : i32
    return %arg0, %c0_i32 : i32, i32
  }
  func.func @transform_3(%arg0: i32) -> (i32, i32) {
    %c0_i32 = arith.constant 0 : i32
    %c0_i32_0 = arith.constant 0 : i32
    return %arg0, %c0_i32 : i32, i32
  }
  func.func @transform_4(%arg0: i32) -> (i32, i32, i32) {
    %c0_i32 = arith.constant 0 : i32
    %c0_i32_0 = arith.constant 0 : i32
    %c0_i32_1 = arith.constant 0 : i32
    %c0_i32_2 = arith.constant 0 : i32
    return %c0_i32, %c0_i32_0, %c0_i32_1 : i32, i32, i32
  }
  func.func @transform_5(%arg0: i32) -> (i32, i32, i32) {
    %c0_i32 = arith.constant 0 : i32
    %c0_i32_0 = arith.constant 0 : i32
    %c0_i32_1 = arith.constant 0 : i32
    %c0_i32_2 = arith.constant 0 : i32
    return %c0_i32, %c0_i32_0, %c0_i32_1 : i32, i32, i32
  }
  func.func @transform_6(%arg0: i32) -> (i32, i32, i32) {
    %c0_i32 = arith.constant 0 : i32
    %c0_i32_0 = arith.constant 0 : i32
    %c0_i32_1 = arith.constant 0 : i32
    %c0_i32_2 = arith.constant 0 : i32
    return %c0_i32, %c0_i32_0, %c0_i32_1 : i32, i32, i32
  }
  func.func @transform_7(%arg0: i32) -> (i32, i32) {
    %c0_i32 = arith.constant 0 : i32
    %c0_i32_0 = arith.constant 0 : i32
    return %arg0, %c0_i32 : i32, i32
  }
  func.func @transform_8(%arg0: i32) -> (i32, i32) {
    %c0_i32 = arith.constant 0 : i32
    %c0_i32_0 = arith.constant 0 : i32
    return %arg0, %c0_i32 : i32, i32
  }
}

</mosaic_0001>

<bundles_post_ra>
// kernel: binary_tree_lstm_layer.1
= control target key start
LH: loop header
LB: loop body
LE: loop exit
PB: predicated region body
PF: predicated region fallthrough
CT: control target
= control target key end

     0   :  { %14 = vsyncpa [#allocation3], 0  ;;  %vm42_vm0 = vcmask 261120   ;;  %s1169_s0 = inlined_call_operand.vmem [shape: f32[16,32], index: 0, kind: input, shape index: {}]   ;;  %s1170_s1 = inlined_call_operand.vmem [shape: f32[16,32], index: 1, kind: input, shape index: {}]   ;;  %s1171_s2 = inlined_call_operand.vmem [shape: f32[16,32], index: 2, kind: input, shape index: {}]   ;;  %s1172_s3 = inlined_call_operand.vmem [shape: f32[16,32], index: 3, kind: input, shape index: {}]   ;;  %s1173_s4 = inlined_call_operand.vmem [shape: f32[5,32,32], index: 4, kind: input, shape index: {}]   ;;  %s1174_s5 = inlined_call_operand.vmem [shape: f32[5,32,32], index: 5, kind: input, shape index: {}]   ;;  %s1175_s6 = inlined_call_operand.vmem [shape: f32[5,1,32], index: 6, kind: input, shape index: {}]   ;;  %s1176_s7 = inlined_call_operand.hbm [shape: f32[16,32], index: 7, kind: output, shape index: {0}]   ;;  %s1177_s8 = inlined_call_operand.hbm [shape: f32[16,32], index: 8, kind: output, shape index: {1}]  }
   0x1   :  { %v41_v0 = vld [vmem:[%s1174_s5 + $0x18] sm:$0xff]  ;;  %v40_v2 = vld [vmem:[%s1174_s5 + $0x10] sm:$0xff]  ;;  %v39_v4 = vld [vmem:[%s1174_s5 + $0x8] sm:$0xff] }
   0x2   :  { %v37_v1 = vld [vmem:[%s1173_s4 + $0x18] sm:$0xff]  ;;  %61 = vmatpush.msra.mxu0 %v41_v0  ;;  %635 = vmatpush.msra.mxu2 %v41_v0  ;;  %v36_v3 = vld [vmem:[%s1173_s4 + $0x10] sm:$0xff]  ;;  %v35_v5 = vld [vmem:[%s1173_s4 + $0x8] sm:$0xff] }
   0x3   :  { %90 = vmatpush.msra.mxu1 %v37_v1  ;;  %639 = vmatpush.msra.mxu3 %v37_v1  ;;  %v38_v6 = vld [vmem:[%s1174_s5] sm:$0xff]  ;;  %v825_v9 = vld [vmem:[%s1171_s2 + $0x8] sm:$0xff]  ;;  %v582_v12 = vld [vmem:[%s1174_s5 + $0x38] sm:$0xff] }
   0x4   :  { %62 = vmatpush.msra.mxu0 %v40_v2  ;;  %636 = vmatpush.msra.mxu2 %v40_v2  ;;  %v34_v7 = vld [vmem:[%s1173_s4] sm:$0xff]  ;;  %v835_v11 = vld [vmem:[%s1169_s0 + $0x8] sm:$0xff]  ;;  %v578_v13 = vld [vmem:[%s1173_s4 + $0x38] sm:$0xff] }
   0x5   :  { %91 = vmatpush.msra.mxu1 %v36_v3  ;;  %640 = vmatpush.msra.mxu3 %v36_v3  ;;  %v820_v8 = vld [vmem:[%s1171_s2] sm:$0xff]  ;;  %v595_v14 = vld [vmem:[%s1174_s5 + $0x58] sm:$0xff]  ;;  %v581_v16 = vld [vmem:[%s1174_s5 + $0x30] sm:$0xff] }
   0x6   :  { %63 = vmatpush.msra.mxu0 %v39_v4  ;;  %637 = vmatpush.msra.mxu2 %v39_v4  ;;  %v830_v10 = vld [vmem:[%s1169_s0] sm:$0xff]  ;;  %v591_v15 = vld [vmem:[%s1173_s4 + $0x58] sm:$0xff]  ;;  %v577_v17 = vld [vmem:[%s1173_s4 + $0x30] sm:$0xff] }
   0x7   :  { %92 = vmatpush.msra.mxu1 %v35_v5  ;;  %641 = vmatpush.msra.mxu3 %v35_v5  ;;  %v594_v18 = vld [vmem:[%s1174_s5 + $0x50] sm:$0xff]  ;;  %v580_v20 = vld [vmem:[%s1174_s5 + $0x28] sm:$0xff]  ;;  %v579_v24 = vld [vmem:[%s1174_s5 + $0x20] sm:$0xff] }
   0x8   :  { %64 = vmatpush.msra.mxu0 %v38_v6  ;;  %638 = vmatpush.msra.mxu2 %v38_v6  ;;  %v590_v19 = vld [vmem:[%s1173_s4 + $0x50] sm:$0xff]  ;;  %v576_v21 = vld [vmem:[%s1173_s4 + $0x28] sm:$0xff]  ;;  %v575_v25 = vld [vmem:[%s1173_s4 + $0x20] sm:$0xff] }
   0x9   :  { %93 = vmatpush.msra.mxu1 %v34_v7  ;;  %642 = vmatpush.msra.mxu3 %v34_v7  ;;  %v593_v22 = vld [vmem:[%s1174_s5 + $0x48] sm:$0xff]  ;;  %v592_v26 = vld [vmem:[%s1174_s5 + $0x40] sm:$0xff] }
   0xa   :  { %571 = vmatmul.msk.f32.vlgmr.msra.gmra.mxu0 %vm42_vm0, %v820_v8  ;;  %572 = vmatmul.msk.f32.vlgmr.msra.gmra.mxu2 %vm42_vm0, %v825_v9  ;;  %v589_v23 = vld [vmem:[%s1173_s4 + $0x48] sm:$0xff]  ;;  %v588_v27 = vld [vmem:[%s1173_s4 + $0x40] sm:$0xff] }
   0xb   :  { %573 = vmatmul.msk.f32.vlgmr.msra.gmra.mxu1 %vm42_vm0, %v830_v10  ;;  %574 = vmatmul.msk.f32.vlgmr.msra.gmra.mxu3 %vm42_vm0, %v835_v11 }
   0xc   :  { %129 = vmatpush.msrb.mxu2 %v582_v12  ;;  %152 = vmatpush.msrb.mxu3 %v578_v13 }
   0xd   :  { %192 = vmatpush.msrb.mxu0 %v595_v14  ;;  %215 = vmatpush.msrb.mxu1 %v591_v15 }
   0xe   :  { %130 = vmatpush.msrb.mxu2 %v581_v16  ;;  %153 = vmatpush.msrb.mxu3 %v577_v17 }
   0xf   :  { %193 = vmatpush.msrb.mxu0 %v594_v18  ;;  %216 = vmatpush.msrb.mxu1 %v590_v19 }
  0x10   :  { %131 = vmatpush.msrb.mxu2 %v580_v20  ;;  %154 = vmatpush.msrb.mxu3 %v576_v21 }
  0x11   :  { %194 = vmatpush.msrb.mxu0 %v593_v22  ;;  %217 = vmatpush.msrb.mxu1 %v589_v23 }
  0x12   :  { %15 = vsyncpa [#allocation5], 0  ;;  %132 = vmatpush.msrb.mxu2 %v579_v24  ;;  %155 = vmatpush.msrb.mxu3 %v575_v25  ;;  %v621_v28 = vld [vmem:[%s1174_s5 + $0x98] sm:$0xff]  ;;  %v620_v32 = vld [vmem:[%s1174_s5 + $0x90] sm:$0xff]  ;;  %s554_s14 = sshll.u32 %s1177_s8, 4  ;;  %s745_s8 = smov 128   ;;  %s555_s14 = int_to_ptr.hbm [resolvable:$true] %s554_s14 }
  0x13   :  { %195 = vmatpush.msrb.mxu0 %v592_v26  ;;  %218 = vmatpush.msrb.mxu1 %v588_v27  ;;  %v617_v29 = vld [vmem:[%s1173_s4 + $0x98] sm:$0xff]  ;;  %v616_v33 = vld [vmem:[%s1173_s4 + $0x90] sm:$0xff]  ;;  %v619_v36 = vld [vmem:[%s1174_s5 + $0x88] sm:$0xff]  ;;  %s746_s15 = smov 8   ;;  %s747_s16 = smov [#allocation2]  }
  0x14   :  { %583 = vmatmul.msk.f32.vlgmr.msrb.gmra.mxu2 %vm42_vm0, %v820_v8  ;;  %585 = vmatmul.msk.f32.vlgmr.msrb.gmra.mxu3 %vm42_vm0, %v830_v10  ;;  %v608_v30 = vld [vmem:[%s1174_s5 + $0x78] sm:$0xff]  ;;  %v607_v34 = vld [vmem:[%s1174_s5 + $0x70] sm:$0xff]  ;;  %v615_v37 = vld [vmem:[%s1173_s4 + $0x88] sm:$0xff]  ;;  %s539_s17 = sshll.u32 %s747_s16, 4  ;;  %s541_s20 = sshll.u32 %s1176_s7, 4  ;;  %s540_s17 = int_to_ptr.vmem [resolvable:$true] %s539_s17  ;;  %s542_s20 = int_to_ptr.hbm [resolvable:$true] %s541_s20 }
  0x15   :  { %v604_v31 = vld [vmem:[%s1173_s4 + $0x78] sm:$0xff]  ;;  %596 = vmatmul.msk.f32.vlgmr.msrb.gmra.mxu0 %vm42_vm0, %v820_v8  ;;  %598 = vmatmul.msk.f32.vlgmr.msrb.gmra.mxu1 %vm42_vm0, %v830_v10  ;;  %v603_v35 = vld [vmem:[%s1173_s4 + $0x70] sm:$0xff]  ;;  %v606_v38 = vld [vmem:[%s1174_s5 + $0x68] sm:$0xff] }
  0x16   :  { %318 = vmatpush.msra.mxu0 %v621_v28  ;;  %341 = vmatpush.msra.mxu1 %v617_v29  ;;  %v602_v39 = vld [vmem:[%s1173_s4 + $0x68] sm:$0xff]  ;;  %v605_v40 = vld [vmem:[%s1174_s5 + $0x60] sm:$0xff] }
  0x17   :  { %255 = vmatpush.msra.mxu2 %v608_v30  ;;  %278 = vmatpush.msra.mxu3 %v604_v31  ;;  %v601_v41 = vld [vmem:[%s1173_s4 + $0x60] sm:$0xff] }
  0x18   :  { %319 = vmatpush.msra.mxu0 %v620_v32  ;;  %342 = vmatpush.msra.mxu1 %v616_v33  ;;  %v618_v42 = vld [vmem:[%s1174_s5 + $0x80] sm:$0xff] }
  0x19   :  { %256 = vmatpush.msra.mxu2 %v607_v34  ;;  %279 = vmatpush.msra.mxu3 %v603_v35  ;;  %v614_v43 = vld [vmem:[%s1173_s4 + $0x80] sm:$0xff] }
  0x1a   :  { %320 = vmatpush.msra.mxu0 %v619_v36  ;;  %343 = vmatpush.msra.mxu1 %v615_v37  ;;  %v647_v45 = vld [vmem:[%s1175_s6] ss:$0 sm:$0xff]  ;;  %v648_v54 = vld [vmem:[%s1175_s6 + $0x2] ss:$0 sm:$0xff]  ;;  %v649_v62 = vld [vmem:[%s1175_s6 + $0x1] ss:$0 sm:$0xff] }
  0x1b   :  { %257 = vmatpush.msra.mxu2 %v606_v38  ;;  %280 = vmatpush.msra.mxu3 %v602_v39  ;;  %v650_v18 = vld [vmem:[%s1175_s6 + $0x4] ss:$0 sm:$0xff]  ;;  %v1014_v39 = vld [vmem:[%s1175_s6 + $0x3] ss:$0 sm:$0xff] }
  0x1c   :  { %584 = vmatmul.msk.f32.gmra.mxu2 %vm42_vm0, %v825_v9  ;;  %586 = vmatmul.msk.f32.gmra.mxu3 %vm42_vm0, %v835_v11 }
  0x1d   :  { %597 = vmatmul.msk.f32.gmra.mxu0 %vm42_vm0, %v825_v9  ;;  %599 = vmatmul.msk.f32.gmra.mxu1 %vm42_vm0, %v835_v11 }
  0x1e   :  { %258 = vmatpush.msra.mxu2 %v605_v40  ;;  %281 = vmatpush.msra.mxu3 %v601_v41 }
  0x1f   :  { %321 = vmatpush.msra.mxu0 %v618_v42  ;;  %344 = vmatpush.msra.mxu1 %v614_v43 }
  0x24   :  { %609 = vmatmul.msk.f32.vlgmr.msra.gmra.mxu2 %vm42_vm0, %v820_v8  ;;  %611 = vmatmul.msk.f32.vlgmr.msra.gmra.mxu3 %vm42_vm0, %v830_v10 }
  0x25   :  { %622 = vmatmul.msk.f32.vlgmr.msra.gmra.mxu0 %vm42_vm0, %v820_v8  ;;  %624 = vmatmul.msk.f32.vlgmr.msra.gmra.mxu1 %vm42_vm0, %v830_v10 }
  0x2c   :  { %610 = vmatmul.msk.f32.gmra.mxu2 %vm42_vm0, %v825_v9  ;;  %612 = vmatmul.msk.f32.gmra.mxu3 %vm42_vm0, %v835_v11 }
  0x2d   :  { %623 = vmatmul.msk.f32.gmra.mxu0 %vm42_vm0, %v825_v9  ;;  %625 = vmatmul.msk.f32.gmra.mxu1 %vm42_vm0, %v835_v11 }
  0x87   :  { %v66_v44 = vpop.f32.mrf.mxu0 }
  0x88   :  { %v95_v46 = vpop.f32.mrf.mxu1 }
  0x89   :  { %v96_v47 = vadd.f32 %v95_v46, %v66_v44 }
  0x8b   :  { %v105_v48 = vadd.f32 %v647_v45, %v96_v47 }
  0x8d   :  { %v631_v49 = vmul.f32 -1.442695, %v105_v48  ;;  %v69_v50 = vpop.f32.mrf.mxu2 }
  0x8e   :  { %v98_v51 = vpop.f32.mrf.mxu3 }
  0x8f   :  { %652 = vpow2.f32 %v631_v49  ;;  %v99_v52 = vadd.f32 %v98_v51, %v69_v50 }
  0x91   :  { %v106_v53 = vadd.f32 %v647_v45, %v99_v52 }
  0x92   :  { %v197_v55 = vpop.f32.mrf.mxu0  ;;  %v220_v56 = vpop.f32.mrf.mxu1 }
  0x93   :  { %v632_v57 = vmul.f32 -1.442695, %v106_v53  ;;  %v221_v58 = vadd.f32 %v220_v56, %v197_v55 }
  0x95   :  { %v653_v59 = vpop.eup %652  ;;  %v231_v60 = vadd.f32 %v648_v54, %v221_v58  ;;  %654 = vpow2.f32 %v632_v57 }
  0x96   :  { %v979_v61 = vadd.f32 1.0, %v653_v59 }
  0x97   :  { %v629_v63 = vmul.f32 -1.442695, %v231_v60  ;;  %v134_v0 = vpop.f32.mrf.mxu2  ;;  %v157_v1 = vpop.f32.mrf.mxu3 }
  0x98   :  { %656 = vrcp.f32 %v979_v61  ;;  %v158_v2 = vadd.f32 %v157_v1, %v134_v0  ;;  %v466_v33 = vand.u32 2147483648, %v979_v61  ;;  %v464_v35 = vand.u32 2147483647, %v979_v61 }
  0x99   :  { %658 = vpow2.f32 %v629_v63  ;;  %vm460_vm1 = vweird.f32 %v979_v61 }
  0x9a   :  { %v168_v3 = vadd.f32 %v649_v62, %v158_v2  ;;  %v200_v4 = vpop.f32.mrf.mxu0  ;;  %v223_v5 = vpop.f32.mrf.mxu1  ;;  %v467_v48 = vor.u32 1.1754944e-38, %v466_v33  ;;  %vm1025_vm3 = vcmp.eq.f32.partialorder %v464_v35, 8.507059e+37 }
  0x9b   :  { %v224_v6 = vadd.f32 %v223_v5, %v200_v4  ;;  %v655_v7 = vpop.eup %654 }
  0x9c   :  { %v627_v8 = vmul.f32 -1.442695, %v168_v3  ;;  %v987_v12 = vadd.f32 1.0, %v655_v7 }
  0x9d   :  { %v232_v9 = vadd.f32 %v648_v54, %v224_v6 }
  0x9e   :  { %v985_v10 = vpop.eup %656  ;;  %660 = vpow2.f32 %v627_v8  ;;  %v481_v40 = vand.u32 2147483648, %v987_v12  ;;  %v479_v52 = vand.u32 2147483647, %v987_v12  ;;  %vm475_vm13 = vweird.f32 %v987_v12 }
  0x9f   :  { %v659_v11 = vpop.eup %658  ;;  %v630_v13 = vmul.f32 -1.442695, %v232_v9  ;;  %v137_v14 = vpop.f32.mrf.mxu2  ;;  %v456_v19 = vmul.f32 %v985_v10, %v979_v61  ;;  %vm461_vm2 = vweird.f32 %v985_v10 }
  0xa0   :  { %v160_v15 = vpop.f32.mrf.mxu3  ;;  %v989_v16 = vadd.f32 1.0, %v659_v11  ;;  %v1033_v56 = vor.u32 1.1754944e-38, %v481_v40  ;;  %vm1056_vm7 = vmor %vm460_vm1, %vm461_vm2 }
  0xa1   :  { %v161_v17 = vadd.f32 %v160_v15, %v137_v14  ;;  %662 = vpow2.f32 %v630_v13  ;;  %v457_v27 = vsub.f32 1.0, %v456_v19 }
  0xa2   :  { %664 = vrcp.f32 %v989_v16  ;;  %v323_v20 = vpop.f32.mrf.mxu0  ;;  %v346_v21 = vpop.f32.mrf.mxu1  ;;  %v420_v41 = vand.u32 2147483647, %v989_v16  ;;  %v422_v47 = vand.u32 2147483648, %v989_v16  ;;  %vm416_vm4 = vweird.f32 %v989_v16 }
  0xa3   :  { %666 = vrcp.f32 %v987_v12  ;;  %v169_v22 = vadd.f32 %v649_v62, %v161_v17  ;;  %v347_v23 = vadd.f32 %v346_v21, %v323_v20  ;;  %v458_v43 = vmul.f32 %v985_v10, %v457_v27 }
  0xa4   :  { %v661_v24 = vpop.eup %660  ;;  %vm1035_vm5 = vcmp.eq.f32.partialorder %v420_v41, 8.507059e+37  ;;  %v423_v1 = vor.u32 1.1754944e-38, %v422_v47 }
  0xa5   :  { %v628_v25 = vmul.f32 -1.442695, %v169_v22  ;;  %v357_v26 = vadd.f32 %v650_v18, %v347_v23  ;;  %v998_v28 = vadd.f32 1.0, %v661_v24  ;;  %v459_v60 = vadd.f32 %v985_v10, %v458_v43 }
  0xa7   :  { %v663_v29 = vpop.eup %662  ;;  %668 = vpow2.f32 %v628_v25  ;;  %v633_v30 = vmul.f32 -1.442695, %v357_v26  ;;  %v260_v31 = vpop.f32.mrf.mxu2  ;;  %v380_v4 = vand.u32 2147483647, %v998_v28  ;;  %v382_v5 = vand.u32 2147483648, %v998_v28 }
  0xa8   :  { %v283_v32 = vpop.f32.mrf.mxu3  ;;  %v1001_v34 = vpop.eup %664  ;;  %670 = vrcp.f32 %v998_v28  ;;  %v1009_v38 = vadd.f32 1.0, %v663_v29  ;;  %vm376_vm9 = vweird.f32 %v998_v28  ;;  %v463_v61 = vsel %vm1056_vm7, %v985_v10, %v459_v60  ;;  %v359_v29 = vld [vmem:[%s1170_s1] sm:$0xff] }
  0xa9   :  { %v1005_v36 = vpop.eup %666  ;;  %v412_v37 = vmul.f32 %v1001_v34, %v989_v16  ;;  %672 = vpow2.f32 %v633_v30  ;;  %v284_v42 = vadd.f32 %v283_v32, %v260_v31  ;;  %vm417_vm6 = vweird.f32 %v1001_v34  ;;  %v361_v30 = vld [vmem:[%s1172_s3] sm:$0xff] }
  0xaa   :  { %v326_v44 = vpop.f32.mrf.mxu0  ;;  %v349_v45 = vpop.f32.mrf.mxu1  ;;  %674 = vrcp.f32 %v1009_v38  ;;  %v471_v49 = vmul.f32 %v1005_v36, %v987_v12  ;;  %vm1064_vm8 = vmor %vm416_vm4, %vm417_vm6  ;;  %vm476_vm11 = vweird.f32 %v1005_v36  ;;  %vm1079_vm12 = vcmp.eq.f32.partialorder %v380_v4, 8.507059e+37 }
  0xab   :  { %v413_v46 = vsub.f32 1.0, %v412_v37  ;;  %v350_v51 = vadd.f32 %v349_v45, %v326_v44  ;;  %v294_v55 = vadd.f32 %v1014_v39, %v284_v42  ;;  %v383_v23 = vor.u32 1.1754944e-38, %v382_v5  ;;  %vm1133_vm7 = vmor %vm475_vm13, %vm476_vm11 }
  0xac   :  { %v472_v3 = vsub.f32 1.0, %v471_v49  ;;  %vm431_vm14 = vweird.f32 %v1009_v38  ;;  %v468_v24 = vsel %vm1025_vm3, %v467_v48, %v463_v61  ;;  %v435_v27 = vand.u32 2147483647, %v1009_v38 }
  0xad   :  { %v669_v53 = vpop.eup %668  ;;  %v414_v54 = vmul.f32 %v1001_v34, %v413_v46  ;;  %v358_v62 = vadd.f32 %v650_v18, %v350_v51  ;;  %vm480_vm11 = vcmp.eq.f32.partialorder %v479_v52, 8.507059e+37 }
  0xae   :  { %v671_v57 = vpop.eup %670  ;;  %v1039_v59 = vadd.f32 1.0, %v669_v53  ;;  %v473_v22 = vmul.f32 %v1005_v36, %v472_v3  ;;  %vm436_vm4 = vcmp.eq.f32.partialorder %v435_v27, 8.507059e+37 }
  0xaf   :  { %v673_v63 = vpop.eup %672  ;;  %v415_v0 = vadd.f32 %v1001_v34, %v414_v54  ;;  %v372_v2 = vmul.f32 %v671_v57, %v998_v28  ;;  %v263_v6 = vpop.f32.mrf.mxu2  ;;  %v634_v14 = vmul.f32 -1.442695, %v358_v62  ;;  %vm377_vm10 = vweird.f32 %v671_v57 }
  0xb0   :  { %676 = vrcp.f32 %v1039_v59  ;;  %v286_v7 = vpop.f32.mrf.mxu3  ;;  %v1048_v8 = vpop.eup %674  ;;  %v1050_v11 = vadd.f32 1.0, %v673_v63  ;;  %vm378_vm15 = vmor %vm376_vm9, %vm377_vm10  ;;  %v437_v28 = vand.u32 2147483648, %v1009_v38  ;;  %v395_v40 = vand.u32 2147483647, %v1039_v59 }
  0xb1   :  { %v373_v9 = vsub.f32 1.0, %v372_v2  ;;  %678 = vtanh.f32 %v294_v55  ;;  %v427_v17 = vmul.f32 %v1048_v8, %v1009_v38  ;;  %v419_v16 = vsel %vm1064_vm8, %v1001_v34, %v415_v0  ;;  %v360_v0 = vld [vmem:[%s1170_s1 + $0x8] sm:$0xff]  ;;  %s744_s1 = smov [#allocation4]  }
  0xb2   :  { %680 = vrcp.f32 %v1050_v11  ;;  %v287_v19 = vadd.f32 %v286_v7, %v263_v6  ;;  %v424_v31 = vsel %vm1035_vm5, %v423_v1, %v419_v16  ;;  %vm432_vm1 = vweird.f32 %v1048_v8  ;;  %v362_v1 = vld [vmem:[%s1172_s3 + $0x8] sm:$0xff]  ;;  %s552_s3 = sshll.u32 %s744_s1, 4  ;;  %s553_s3 = int_to_ptr.vmem [resolvable:$true] %s552_s3 }
  0xb3   :  { %v374_v18 = vmul.f32 %v671_v57, %v373_v9  ;;  %v428_v21 = vsub.f32 1.0, %v427_v17  ;;  %682 = vpow2.f32 %v634_v14  ;;  %v474_v42 = vadd.f32 %v1005_v36, %v473_v22  ;;  %vm1113_vm2 = vmor %vm431_vm14, %vm432_vm1 }
  0xb4   :  { %v295_v32 = vadd.f32 %v1014_v39, %v287_v19  ;;  %v397_v39 = vand.u32 2147483648, %v1039_v59  ;;  %v441_v46 = vmul.f32 %v424_v31, %v361_v30  ;;  %vm391_vm5 = vweird.f32 %v1039_v59 }
  0xb5   :  { %v375_v10 = vadd.f32 %v671_v57, %v374_v18  ;;  %v429_v26 = vmul.f32 %v1048_v8, %v428_v21  ;;  %vm1124_vm6 = vcmp.eq.f32.partialorder %v395_v40, 8.507059e+37  ;;  %v478_v5 = vsel %vm1133_vm7, %v1005_v36, %v474_v42 }
  0xb6   :  { %v677_v25 = vpop.eup %676  ;;  %684 = vtanh.f32 %v295_v32  ;;  %v508_v6 = vand.u32 2147483648, %v1050_v11  ;;  %vm502_vm10 = vweird.f32 %v1050_v11  ;;  %v506_v13 = vand.u32 2147483647, %v1050_v11 }
  0xb7   :  { %v679_v33 = vpop.eup %678  ;;  %v387_v34 = vmul.f32 %v677_v25, %v1039_v59  ;;  %v379_v35 = vsel %vm378_vm15, %v671_v57, %v375_v10  ;;  %v430_v37 = vadd.f32 %v1048_v8, %v429_v26  ;;  %vm392_vm3 = vweird.f32 %v677_v25 }
  0xb8   :  { %v384_v41 = vsel %vm1079_vm12, %v383_v23, %v379_v35  ;;  %v681_v43 = vpop.eup %680  ;;  %v485_v50 = vmul.f32 %v679_v33, %v468_v24  ;;  %v438_v57 = vor.u32 1.1754944e-38, %v437_v28  ;;  %vm393_vm8 = vmor %vm391_vm5, %vm392_vm3  ;;  %v398_v59 = vor.u32 1.1754944e-38, %v397_v39 }
  0xb9   :  { %v388_v44 = vsub.f32 1.0, %v387_v34  ;;  %v401_v45 = vmul.f32 %v384_v41, %v359_v29  ;;  %v683_v47 = vpop.eup %682  ;;  %v498_v49 = vmul.f32 %v681_v43, %v1050_v11  ;;  %v434_v55 = vsel %vm1113_vm2, %v1048_v8, %v430_v37 }
  0xba   :  { %v1118_v54 = vadd.f32 1.0, %v683_v47  ;;  %v439_v2 = vsel %vm436_vm4, %v438_v57, %v434_v55  ;;  %vm503_vm9 = vweird.f32 %v681_v43  ;;  %v483_v17 = vsel %vm480_vm11, %v1033_v56, %v478_v5 }
  0xbb   :  { %v389_v51 = vmul.f32 %v677_v25, %v388_v44  ;;  %v443_v53 = vadd.f32 %v441_v46, %v401_v45  ;;  %v499_v38 = vsub.f32 1.0, %v498_v49  ;;  %v442_v15 = vmul.f32 %v439_v2, %v362_v1  ;;  %vm504_vm12 = vmor %vm502_vm10, %vm503_vm9 }
  0xbc   :  { %686 = vrcp.f32 %v1118_v54  ;;  %v685_v7 = vpop.eup %684  ;;  %v509_v19 = vor.u32 1.1754944e-38, %v508_v6  ;;  %vm507_vm13 = vcmp.eq.f32.partialorder %v506_v13, 8.507059e+37  ;;  %v523_v22 = vand.u32 2147483648, %v1118_v54 }
  0xbd   :  { %v390_v58 = vadd.f32 %v677_v25, %v389_v51  ;;  %v487_v62 = vadd.f32 %v485_v50, %v443_v53  ;;  %v500_v3 = vmul.f32 %v681_v43, %v499_v38  ;;  %v486_v16 = vmul.f32 %v685_v7, %v483_v17 }
  0xbe   :  { %v521_v23 = vand.u32 2147483647, %v1118_v54  ;;  %vm517_vm15 = vweird.f32 %v1118_v54 }
  0xbf   :  { %688 = vtanh.f32 %v487_v62  ;;  %531 = vst.msk [vmem:[#allocation4] sm:$0xff] %vm42_vm0, %v487_v62  ;;  %v394_v4 = vsel %vm393_vm8, %v677_v25, %v390_v58  ;;  %v501_v9 = vadd.f32 %v681_v43, %v500_v3  ;;  %v524_v25 = vor.u32 1.1754944e-38, %v523_v22 }
  0xc0   :  { %v399_v8 = vsel %vm1124_vm6, %v398_v59, %v394_v4  ;;  %vm522_vm2 = vcmp.eq.f32.partialorder %v521_v23, 8.507059e+37 }
  0xc1   :  { %v402_v14 = vmul.f32 %v399_v8, %v360_v0  ;;  %v505_v36 = vsel %vm504_vm12, %v681_v43, %v501_v9 }
  0xc2   :  { %v687_v61 = vpop.eup %686  ;;  %v510_v52 = vsel %vm507_vm13, %v509_v19, %v505_v36 }
  0xc3   :  { %v444_v18 = vadd.f32 %v442_v15, %v402_v14  ;;  %v513_v11 = vmul.f32 %v687_v61, %v1118_v54  ;;  %vm518_vm14 = vweird.f32 %v687_v61 }
  0xc4   :  { %vm519_vm1 = vmor %vm517_vm15, %vm518_vm14 }
  0xc5   :  { %v689_v20 = vpop.eup %688  ;;  %v488_v12 = vadd.f32 %v486_v16, %v444_v18  ;;  %v514_v56 = vsub.f32 1.0, %v513_v11 }
  0xc6   :  { %v529_v21 = vmul.f32 %v689_v20, %v510_v52 }
  0xc7   :  { %690 = vtanh.f32 %v488_v12  ;;  %532 = vst.msk [vmem:[#allocation4 + $0x8] sm:$0xff] %vm42_vm0, %v488_v12  ;;  %v515_v10 = vmul.f32 %v687_v61, %v514_v56 }
  0xc8   :  { %533 = vst.msk [vmem:[#allocation2] sm:$0xff] %vm42_vm0, %v529_v21  ;;  %560 = dma.vmem_to_hbm [thread:$0]  %s553_s3, 256, %s555_s14, [#allocation5], %s745_s8, %s745_s8, %s746_s15  }
  0xc9   :  { %v516_v24 = vadd.f32 %v687_v61, %v515_v10 }
  0xcb   :  { %v520_v26 = vsel %vm519_vm1, %v687_v61, %v516_v24 }
  0xcc   :  { %v525_v29 = vsel %vm522_vm2, %v524_v25, %v520_v26 }
  0xcd   :  { %v691_v27 = vpop.eup %690 }
  0xce   :  { %v530_v30 = vmul.f32 %v691_v27, %v525_v29 }
  0xd0   :  { %534 = vst.msk [vmem:[#allocation2 + $0x8] sm:$0xff] %vm42_vm0, %v530_v30 }
  0xd1   :  { %547 = dma.vmem_to_hbm [thread:$0]  %s540_s17, 256, %s542_s20, [#allocation3], %s745_s8, %s745_s8, %s746_s15  }
  0xd2   :  { %740 = dma.done.wait [#allocation3], 256  }
  0xd3   :  { %741 = vsyncadd [#allocation3], 4294967040 }
  0xd4   :  { %742 = dma.done.wait [#allocation5], 256  }
  0xd5   :  { %743 = vsyncadd [#allocation5], 4294967040 }
  0xd6   :  { %569 = vsyncpa [#allocation3], 1 }
  0xd7   :  { %570 = vsyncpa [#allocation5], 1 }

</bundles_post_ra>
